<compile_context>
chip_gen: v7x
topology: tpu7x:2x2x1
jax: 0.10.0
libtpu: 0.0.40
codegen_flags: <defaults>
</compile_context>

<pallas_src>
import functools

import jax
import jax.numpy as jnp
from jax.experimental import pallas as pl
from jax.experimental.pallas import tpu as pltpu

LANES = 128  # TPU lane width; all channel-like dims are zero-padded to this.


def _tap_packing(ksize, cin):
    """How many conv taps share one 128-lane contraction group."""
    taps_per_group = max(1, min(ksize, LANES // cin))
    n_groups = -(-ksize // taps_per_group)
    return taps_per_group, n_groups


# ----------------------------- fused Pallas kernel ---------------------------


def _fused_tcn_kernel(tok_ref, emb_ref, *refs, blocks_meta, ksize, seq_len, mxu_dtype):
    """Embedding -> all TemporalBlocks -> Linear decoder for one block of rows.

    tok_ref : (R, 1) int32, R = (#sequences in this block) * seq_len
    emb_ref : (LANES, LANES) mxu_dtype zero-padded embedding table
    refs    : per block [w1, b1, w2, b2, (wd, bd)?] ..., dec_w, dec_b, out_ref
              conv w : (n_groups*LANES, LANES) mxu_dtype, taps lane-packed
              b*, bd, dec_b : (1, LANES) float32
    out_ref : (R, LANES) bf16 (lane-padded logits)
    """
    out_ref = refs[-1]
    wrefs = refs[:-1]
    rows = tok_ref.shape[0]

    # Hoisted iotas / masks (JAX does not CSE broadcast_in_dim -- build once).
    row_in_seq = jax.lax.broadcasted_iota(jnp.int32, (rows, LANES), 0) % seq_len
    lane_idx = jax.lax.broadcasted_iota(jnp.int32, (rows, LANES), 1)
    all_shifts = sorted(
        {(ksize - 1 - k) * d for d, _, _, _ in blocks_meta for k in range(ksize)} - {0})
    masks = {s: row_in_seq >= s for s in all_shifts if s < seq_len}

    # --- Embedding lookup as a one-hot matmul (exact; padded lanes stay zero).
    onehot = jnp.where(lane_idx == tok_ref[...], 1.0, 0.0).astype(mxu_dtype)
    x = jnp.dot(onehot, emb_ref[...], preferred_element_type=jnp.float32)  # (R,128) f32

    def causal_conv(h, w_ref, b_ref, dilation, cin):
        """Causal dilated conv == Conv1d(padding=(K-1)*d) + Chomp1d.

        Taps are lane-packed (cin live lanes each) into 128-lane contraction
        groups so the MXU never multiplies zero padding between taps.
        """
        taps_per_group, n_groups = _tap_packing(ksize, cin)
        groups = []
        for g in range(n_groups):
            acc = None
            for jj in range(taps_per_group):
                k = g * taps_per_group + jj
                if k >= ksize:
                    break
                shift = (ksize - 1 - k) * dilation
                if shift == 0:
                    tap = h
                elif shift >= seq_len:
                    continue                      # tap sees only left zero padding
                else:
                    # Roll rows toward higher indices (XLU) and zero the rows
                    # whose position inside their sequence is < shift: exact
                    # causal left-padding despite the flattened (N*L) row axis.
                    tap = jnp.where(masks[shift], pltpu.roll(h, shift, axis=0), 0.0)
                if jj:
                    # Lanes >= cin are exactly zero, so a lane roll + add packs
                    # this tap into lanes [jj*cin, (jj+1)*cin) of the group.
                    tap = pltpu.roll(tap, jj * cin, axis=1)
                acc = tap if acc is None else acc + tap
            if acc is None:
                acc = jnp.zeros_like(h)
            groups.append(acc.astype(mxu_dtype))
        stacked = groups[0] if n_groups == 1 else jnp.concatenate(groups, axis=1)
        return jnp.dot(stacked, w_ref[...],
                       preferred_element_type=jnp.float32) + b_ref[...]

    i = 0
    for dilation, has_down, cin, cout in blocks_meta:
        w1, b1, w2, b2 = wrefs[i], wrefs[i + 1], wrefs[i + 2], wrefs[i + 3]
        i += 4
        # conv1 -> chomp -> relu (dropout = identity), conv2 -> chomp -> relu
        h = jnp.maximum(causal_conv(x, w1, b1, dilation, cin), 0.0)
        h = jnp.maximum(causal_conv(h, w2, b2, dilation, cout), 0.0)
        if has_down:
            wd, bd = wrefs[i], wrefs[i + 1]
            i += 2
            res = jnp.dot(x.astype(mxu_dtype), wd[...],
                          preferred_element_type=jnp.float32) + bd[...]
        else:
            res = x
        x = jnp.maximum(h + res, 0.0)

    dec_w, dec_b = wrefs[i], wrefs[i + 1]
    logits = jnp.dot(x.astype(mxu_dtype), dec_w[...],
                     preferred_element_type=jnp.float32) + dec_b[...]
    out_ref[...] = logits.astype(out_ref.dtype)


# --------------------------------- wrapper -----------------------------------


def _choose_seqs_per_block(N, L, target_rows):
    """Sequence-aligned rows per grid step: prefer >=2 grid steps (pipelining,
    v7x dual TensorCores), rows a multiple of 16 (bf16 output sublane packing),
    rows <= target_rows (VMEM / spill bound), rows as large as possible
    otherwise (MXU-friendly M)."""
    cands = [s for s in range(1, N + 1)
             if N % s == 0 and ((s * L) % 16 == 0 or s == N)]
    fit = [s for s in cands if s * L <= target_rows]
    multi = [s for s in fit if N // s >= 2]
    if multi:
        return max(multi)
    if fit:
        return max(fit)
    return min(cands)


def traffic_tcn_forward(tokens, arrays, *, blocks_meta, ksize, n_categs, mxu_dtype,
                        seqs_per_block=None, target_rows=1024):
    """tokens: (N, L) int -> logits (N, L, n_categs) float32."""
    N, L = tokens.shape
    if seqs_per_block is None:
        seqs_per_block = _choose_seqs_per_block(N, L, target_rows)
    assert N % seqs_per_block == 0
    rows = seqs_per_block * L               # rows per grid block (sequence-aligned)
    assert rows % 8 == 0 or seqs_per_block == N

    tok2d = tokens.reshape(N * L, 1).astype(jnp.int32)
    weights = arrays["weights"]

    kernel = functools.partial(
        _fused_tcn_kernel, blocks_meta=blocks_meta, ksize=ksize,
        seq_len=L, mxu_dtype=mxu_dtype)

    in_specs = [
        pl.BlockSpec((rows, 1), lambda g: (g, 0)),
        pl.BlockSpec(arrays["emb"].shape, lambda g: (0, 0)),
    ] + [pl.BlockSpec(w.shape, lambda g: (0, 0)) for w in weights]

    out = pl.pallas_call(
        kernel,
        out_shape=jax.ShapeDtypeStruct((N * L, LANES), jnp.bfloat16),
        grid=(N // seqs_per_block,),
        in_specs=in_specs,
        out_specs=pl.BlockSpec((rows, LANES), lambda g: (g, 0)),
        compiler_params=pltpu.CompilerParams(
            dimension_semantics=("parallel",),       # shard grid over v7x TCs
            vmem_limit_bytes=32 * 1024 * 1024),
    )(tok2d, arrays["emb"], *weights)

    # Strip lane padding and restore (N, L, n_categs) in f32 (single XLA pass).
    return out[:, :n_categs].astype(jnp.float32).reshape(N, L, n_categs)


# --------------------- parameter packing (pad / pack / cast) ------------------


def _pad2d(a, rows, cols, dtype):
    out = jnp.zeros((rows, cols), dtype)
    return out.at[: a.shape[0], : a.shape[1]].set(a.astype(dtype))


def _pack_conv_weight(w, mxu_dtype):
    """(K, cin, cout) -> (n_groups*128, 128) with taps lane-packed per group."""
    K, cin, cout = w.shape
    assert cin <= LANES and cout <= LANES
    taps_per_group, n_groups = _tap_packing(K, cin)
    out = jnp.zeros((n_groups * LANES, LANES), mxu_dtype)
    for k in range(K):
        g, jj = divmod(k, taps_per_group)
        r0 = g * LANES + jj * cin
        out = out.at[r0:r0 + cin, :cout].set(w[k].astype(mxu_dtype))
    return out


def pack_params(params, ksize, mxu_dtype=jnp.bfloat16):
    """Pad channel dims to 128 lanes, lane-pack conv taps on the contraction
    axis, cast matmul operands to the MXU dtype (biases stay f32, added after
    the f32 accumulation).  Returns (array pytree, static metadata)."""
    n_categs, emb_size = params["emb"].shape
    assert n_categs <= LANES and emb_size <= LANES

    weights = []
    blocks_meta = []
    cin = emb_size
    for i, blk in enumerate(params["blocks"]):
        dilation = 2 ** i
        has_down = "wd" in blk
        cout = blk["w1"].shape[2]
        assert cout <= LANES
        blocks_meta.append((dilation, has_down, cin, cout))
        weights.append(_pack_conv_weight(blk["w1"], mxu_dtype))
        weights.append(_pad2d(blk["b1"], 1, LANES, jnp.float32))
        weights.append(_pack_conv_weight(blk["w2"], mxu_dtype))
        weights.append(_pad2d(blk["b2"], 1, LANES, jnp.float32))
        if has_down:
            weights.append(_pad2d(blk["wd"], LANES, LANES, mxu_dtype))
            weights.append(_pad2d(blk["bd"], 1, LANES, jnp.float32))
        cin = cout
    weights.append(_pad2d(params["dec_w"], LANES, LANES, mxu_dtype))
    weights.append(_pad2d(params["dec_b"], 1, LANES, jnp.float32))

    arrays = {"emb": _pad2d(params["emb"], LANES, LANES, mxu_dtype),
              "weights": tuple(weights)}
    meta = {"blocks_meta": tuple(blocks_meta), "ksize": ksize,
            "n_categs": n_categs, "mxu_dtype": mxu_dtype}
    return arrays, meta


# --------------------------- deterministic init -------------------------------


def init_params(key, n_categs, emb_size, channels, kernel_size):
    keys = iter(jax.random.split(key, 2 + 6 * len(channels)))
    params = {
        "emb": 0.01 * jax.random.normal(next(keys), (n_categs, emb_size), jnp.float32)
    }
    blocks = []
    cin = emb_size
    for cout in channels:
        bound1 = 1.0 / (cin * kernel_size) ** 0.5   # PyTorch Conv1d default bias bound
        bound2 = 1.0 / (cout * kernel_size) ** 0.5
        blk = {
            "w1": 0.01 * jax.random.normal(next(keys), (kernel_size, cin, cout), jnp.float32),
            "b1": jax.random.uniform(next(keys), (1, cout), jnp.float32, -bound1, bound1),
            "w2": 0.01 * jax.random.normal(next(keys), (kernel_size, cout, cout), jnp.float32),
            "b2": jax.random.uniform(next(keys), (1, cout), jnp.float32, -bound2, bound2),
        }
        if cin != cout:  # downsample 1x1 conv on the residual path
            bd = 1.0 / cin ** 0.5
            blk["wd"] = 0.01 * jax.random.normal(next(keys), (cin, cout), jnp.float32)
            blk["bd"] = jax.random.uniform(next(keys), (1, cout), jnp.float32, -bd, bd)
        blocks.append(blk)
        cin = cout
    params["blocks"] = blocks
    params["dec_w"] = 0.01 * jax.random.normal(next(keys), (cin, n_categs), jnp.float32)
    params["dec_b"] = jnp.zeros((1, n_categs), jnp.float32)
    return params


# ------------------------------ pure-JAX reference ----------------------------


def _ref_causal_conv(x, w, b, d, K):
    L = x.shape[1]
    out = jnp.zeros(x.shape[:2] + (w.shape[-1],), jnp.float32)
    for k in range(K):
        shift = (K - 1 - k) * d
        xs = jnp.pad(x, ((0, 0), (shift, 0), (0, 0)))[:, :L, :]
        out = out + jnp.einsum("nlc,cd->nld", xs, w[k])
    return out + b[None]


def reference_forward(tokens, params, kernel_size):
    y = jnp.take(params["emb"], tokens.astype(jnp.int32), axis=0)
    for i, blk in enumerate(params["blocks"]):
        d = 2 ** i
        h = jax.nn.relu(_ref_causal_conv(y, blk["w1"], blk["b1"], d, kernel_size))
        h = jax.nn.relu(_ref_causal_conv(h, blk["w2"], blk["b2"], d, kernel_size))
        if "wd" in blk:
            res = jnp.einsum("nlc,cd->nld", y, blk["wd"]) + blk["bd"][None]
        else:
            res = y
        y = jax.nn.relu(h + res)
    return jnp.einsum("nlc,co->nlo", y, params["dec_w"]) + params["dec_b"][None]


# ---------------------------------- main --------------------------------------

if __name__ == "__main__":
    N, L = 2, 16                       # batch, sequence_len
    n_categs, emb_size = 32, 32
    channels = (64, 64)                # channels_size
    kernel_size = 2

    key = jax.random.PRNGKey(0)
    pkey, dkey = jax.random.split(key)
    params = init_params(pkey, n_categs, emb_size, channels, kernel_size)
    tokens = jax.random.randint(dkey, (N, L), 0, n_categs, dtype=jnp.int32)

    arrays, meta = pack_params(params, kernel_size, mxu_dtype=jnp.bfloat16)
    fwd = jax.jit(functools.partial(traffic_tcn_forward, **meta))
    out = jax.block_until_ready(fwd(tokens, arrays))

    assert out.shape == (N, L, n_categs), out.shape
    ref = reference_forward(tokens, params, kernel_size)
    scale = float(jnp.max(jnp.abs(ref)))
    err = float(jnp.max(jnp.abs(out - ref)))
    # bf16 MXU inputs / bf16 output with f32 accumulation -> bf16-level tolerance.
    assert err <= 2e-2 * scale + 1e-6, (err, scale)
    print("KERNEL_OK")
</pallas_src>

<mosaic_0001>
module attributes {stable_mosaic.version = 11 : i64} {
  func.func @_fused_tcn_kernel(%arg0: i32, %arg1: memref<16x1xi32, #tpu.memory_space<vmem>>, %arg2: memref<128x128xbf16, #tpu.memory_space<vmem>>, %arg3: memref<128x128xbf16, #tpu.memory_space<vmem>>, %arg4: memref<1x128xf32, #tpu.memory_space<vmem>>, %arg5: memref<128x128xbf16, #tpu.memory_space<vmem>>, %arg6: memref<1x128xf32, #tpu.memory_space<vmem>>, %arg7: memref<128x128xbf16, #tpu.memory_space<vmem>>, %arg8: memref<1x128xf32, #tpu.memory_space<vmem>>, %arg9: memref<128x128xbf16, #tpu.memory_space<vmem>>, %arg10: memref<1x128xf32, #tpu.memory_space<vmem>>, %arg11: memref<128x128xbf16, #tpu.memory_space<vmem>>, %arg12: memref<1x128xf32, #tpu.memory_space<vmem>>, %arg13: memref<128x128xbf16, #tpu.memory_space<vmem>>, %arg14: memref<1x128xf32, #tpu.memory_space<vmem>>, %arg15: memref<16x128xbf16, #tpu.memory_space<vmem>>) attributes {dimension_semantics = [#tpu.dimension_semantics<parallel>], iteration_bounds = array<i64: 2>, scalar_prefetch = 0 : i64, scratch_operands = 0 : i64, tpu.core_type = #tpu.core_type<tc>, window_params = [{transform_indices = @transform_0, window_bounds = array<i64: 16, 1>}, {pipeline_mode = #tpu.pipeline_mode<synchronous>, transform_indices = @transform_1, window_bounds = array<i64: 128, 128>}, {pipeline_mode = #tpu.pipeline_mode<synchronous>, transform_indices = @transform_2, window_bounds = array<i64: 128, 128>}, {pipeline_mode = #tpu.pipeline_mode<synchronous>, transform_indices = @transform_3, window_bounds = array<i64: 1, 128>}, {pipeline_mode = #tpu.pipeline_mode<synchronous>, transform_indices = @transform_4, window_bounds = array<i64: 128, 128>}, {pipeline_mode = #tpu.pipeline_mode<synchronous>, transform_indices = @transform_5, window_bounds = array<i64: 1, 128>}, {pipeline_mode = #tpu.pipeline_mode<synchronous>, transform_indices = @transform_6, window_bounds = array<i64: 128, 128>}, {pipeline_mode = #tpu.pipeline_mode<synchronous>, transform_indices = @transform_7, window_bounds = array<i64: 1, 128>}, {pipeline_mode = #tpu.pipeline_mode<synchronous>, transform_indices = @transform_8, window_bounds = array<i64: 128, 128>}, {pipeline_mode = #tpu.pipeline_mode<synchronous>, transform_indices = @transform_9, window_bounds = array<i64: 1, 128>}, {pipeline_mode = #tpu.pipeline_mode<synchronous>, transform_indices = @transform_10, window_bounds = array<i64: 128, 128>}, {pipeline_mode = #tpu.pipeline_mode<synchronous>, transform_indices = @transform_11, window_bounds = array<i64: 1, 128>}, {pipeline_mode = #tpu.pipeline_mode<synchronous>, transform_indices = @transform_12, window_bounds = array<i64: 128, 128>}, {pipeline_mode = #tpu.pipeline_mode<synchronous>, transform_indices = @transform_13, window_bounds = array<i64: 1, 128>}, {transform_indices = @transform_14, window_bounds = array<i64: 16, 128>}]} {
    %0 = tpu.iota {dimensions = array<i32: 0>} : vector<16x128xi32>
    %c16_i32 = arith.constant 16 : i32
    %c0_i32 = arith.constant 0 : i32
    %1 = arith.cmpi eq, %c16_i32, %c0_i32 : i32
    %c1_i32 = arith.constant 1 : i32
    %2 = arith.select %1, %c1_i32, %c16_i32 : i32
    %3 = vector.broadcast %2 : i32 to vector<16x128xi32>
    %4 = arith.remsi %0, %3 : vector<16x128xi32>
    %c0_i32_0 = arith.constant 0 : i32
    %5 = vector.broadcast %c0_i32_0 : i32 to vector<16x128xi32>
    %6 = arith.cmpi ne, %4, %5 : vector<16x128xi32>
    %c0_i32_1 = arith.constant 0 : i32
    %7 = vector.broadcast %c0_i32_1 : i32 to vector<16x128xi32>
    %8 = arith.cmpi slt, %4, %7 : vector<16x128xi32>
    %c0_i32_2 = arith.constant 0 : i32
    %9 = arith.cmpi slt, %2, %c0_i32_2 : i32
    %10 = vector.broadcast %9 : i1 to vector<16x128xi1>
    %11 = vector.broadcast %10 : vector<16x128xi1> to vector<16x128xi1>
    %12 = arith.xori %8, %11 : vector<16x128xi1>
    %13 = arith.andi %12, %6 : vector<16x128xi1>
    %14 = vector.broadcast %2 : i32 to vector<16x128xi32>
    %15 = arith.addi %4, %14 : vector<16x128xi32>
    %16 = arith.select %13, %15, %4 : vector<16x128xi1>, vector<16x128xi32>
    %17 = tpu.iota {dimensions = array<i32: 1>} : vector<16x128xi32>
    %c1_i32_3 = arith.constant 1 : i32
    %18 = vector.broadcast %c1_i32_3 : i32 to vector<16x128xi32>
    %19 = arith.cmpi sge, %16, %18 : vector<16x128xi32>
    %c2_i32 = arith.constant 2 : i32
    %20 = vector.broadcast %c2_i32 : i32 to vector<16x128xi32>
    %21 = arith.cmpi sge, %16, %20 : vector<16x128xi32>
    %c0 = arith.constant 0 : index
    %c0_4 = arith.constant 0 : index
    %22 = vector.load %arg1[%c0, %c0_4] : memref<16x1xi32, #tpu.memory_space<vmem>>, vector<16x1xi32>
    %23 = vector.broadcast %22 : vector<16x1xi32> to vector<16x128xi32>
    %24 = arith.cmpi eq, %17, %23 : vector<16x128xi32>
    %cst = arith.constant 1.000000e+00 : f32
    %cst_5 = arith.constant 0.000000e+00 : f32
    %25 = vector.broadcast %cst : f32 to vector<16x128xf32>
    %26 = vector.broadcast %cst_5 : f32 to vector<16x128xf32>
    %27 = arith.select %24, %25, %26 : vector<16x128xi1>, vector<16x128xf32>
    %28 = arith.truncf %27 : vector<16x128xf32> to vector<16x128xbf16>
    %c0_6 = arith.constant 0 : index
    %c0_7 = arith.constant 0 : index
    %29 = vector.load %arg2[%c0_6, %c0_7] : memref<128x128xbf16, #tpu.memory_space<vmem>>, vector<128x128xbf16>
    %cst_8 = arith.constant dense<0.000000e+00> : vector<16x128xf32>
    %30 = tpu.matmul %28, %29, %cst_8 {dimension_numbers = #tpu.dot_dimension_numbers<[1], [0], [0], [1], [0, 0, 1, 1], [], []>} : vector<16x128xbf16>, vector<128x128xbf16>, vector<16x128xf32> -> vector<16x128xf32>
    %c1_i32_9 = arith.constant 1 : i32
    %31 = tpu.dynamic_rotate %30 by %c1_i32_9 dim 0 : vector<16x128xf32>, i32 -> vector<16x128xf32>
    %cst_10 = arith.constant 0.000000e+00 : f32
    %32 = vector.broadcast %cst_10 : f32 to vector<16x128xf32>
    %33 = arith.select %19, %31, %32 : vector<16x128xi1>, vector<16x128xf32>
    %c32_i32 = arith.constant 32 : i32
    %34 = tpu.dynamic_rotate %30 by %c32_i32 dim 1 : vector<16x128xf32>, i32 -> vector<16x128xf32>
    %35 = arith.addf %33, %34 : vector<16x128xf32>
    %36 = arith.truncf %35 : vector<16x128xf32> to vector<16x128xbf16>
    %c0_11 = arith.constant 0 : index
    %c0_12 = arith.constant 0 : index
    %37 = vector.load %arg3[%c0_11, %c0_12] : memref<128x128xbf16, #tpu.memory_space<vmem>>, vector<128x128xbf16>
    %cst_13 = arith.constant dense<0.000000e+00> : vector<16x128xf32>
    %38 = tpu.matmul %36, %37, %cst_13 {dimension_numbers = #tpu.dot_dimension_numbers<[1], [0], [0], [1], [0, 0, 1, 1], [], []>} : vector<16x128xbf16>, vector<128x128xbf16>, vector<16x128xf32> -> vector<16x128xf32>
    %c0_14 = arith.constant 0 : index
    %c0_15 = arith.constant 0 : index
    %39 = vector.load %arg4[%c0_14, %c0_15] : memref<1x128xf32, #tpu.memory_space<vmem>>, vector<1x128xf32>
    %40 = vector.broadcast %39 : vector<1x128xf32> to vector<16x128xf32>
    %41 = arith.addf %38, %40 : vector<16x128xf32>
    %cst_16 = arith.constant 0.000000e+00 : f32
    %42 = vector.broadcast %cst_16 : f32 to vector<16x128xf32>
    %43 = arith.maximumf %41, %42 : vector<16x128xf32>
    %c1_i32_17 = arith.constant 1 : i32
    %44 = tpu.dynamic_rotate %43 by %c1_i32_17 dim 0 : vector<16x128xf32>, i32 -> vector<16x128xf32>
    %cst_18 = arith.constant 0.000000e+00 : f32
    %45 = vector.broadcast %cst_18 : f32 to vector<16x128xf32>
    %46 = arith.select %19, %44, %45 : vector<16x128xi1>, vector<16x128xf32>
    %c64_i32 = arith.constant 64 : i32
    %47 = tpu.dynamic_rotate %43 by %c64_i32 dim 1 : vector<16x128xf32>, i32 -> vector<16x128xf32>
    %48 = arith.addf %46, %47 : vector<16x128xf32>
    %49 = arith.truncf %48 : vector<16x128xf32> to vector<16x128xbf16>
    %c0_19 = arith.constant 0 : index
    %c0_20 = arith.constant 0 : index
    %50 = vector.load %arg5[%c0_19, %c0_20] : memref<128x128xbf16, #tpu.memory_space<vmem>>, vector<128x128xbf16>
    %cst_21 = arith.constant dense<0.000000e+00> : vector<16x128xf32>
    %51 = tpu.matmul %49, %50, %cst_21 {dimension_numbers = #tpu.dot_dimension_numbers<[1], [0], [0], [1], [0, 0, 1, 1], [], []>} : vector<16x128xbf16>, vector<128x128xbf16>, vector<16x128xf32> -> vector<16x128xf32>
    %c0_22 = arith.constant 0 : index
    %c0_23 = arith.constant 0 : index
    %52 = vector.load %arg6[%c0_22, %c0_23] : memref<1x128xf32, #tpu.memory_space<vmem>>, vector<1x128xf32>
    %53 = vector.broadcast %52 : vector<1x128xf32> to vector<16x128xf32>
    %54 = arith.addf %51, %53 : vector<16x128xf32>
    %cst_24 = arith.constant 0.000000e+00 : f32
    %55 = vector.broadcast %cst_24 : f32 to vector<16x128xf32>
    %56 = arith.maximumf %54, %55 : vector<16x128xf32>
    %57 = arith.truncf %30 : vector<16x128xf32> to vector<16x128xbf16>
    %c0_25 = arith.constant 0 : index
    %c0_26 = arith.constant 0 : index
    %58 = vector.load %arg7[%c0_25, %c0_26] : memref<128x128xbf16, #tpu.memory_space<vmem>>, vector<128x128xbf16>
    %cst_27 = arith.constant dense<0.000000e+00> : vector<16x128xf32>
    %59 = tpu.matmul %57, %58, %cst_27 {dimension_numbers = #tpu.dot_dimension_numbers<[1], [0], [0], [1], [0, 0, 1, 1], [], []>} : vector<16x128xbf16>, vector<128x128xbf16>, vector<16x128xf32> -> vector<16x128xf32>
    %c0_28 = arith.constant 0 : index
    %c0_29 = arith.constant 0 : index
    %60 = vector.load %arg8[%c0_28, %c0_29] : memref<1x128xf32, #tpu.memory_space<vmem>>, vector<1x128xf32>
    %61 = vector.broadcast %60 : vector<1x128xf32> to vector<16x128xf32>
    %62 = arith.addf %59, %61 : vector<16x128xf32>
    %63 = arith.addf %56, %62 : vector<16x128xf32>
    %cst_30 = arith.constant 0.000000e+00 : f32
    %64 = vector.broadcast %cst_30 : f32 to vector<16x128xf32>
    %65 = arith.maximumf %63, %64 : vector<16x128xf32>
    %c2_i32_31 = arith.constant 2 : i32
    %66 = tpu.dynamic_rotate %65 by %c2_i32_31 dim 0 : vector<16x128xf32>, i32 -> vector<16x128xf32>
    %cst_32 = arith.constant 0.000000e+00 : f32
    %67 = vector.broadcast %cst_32 : f32 to vector<16x128xf32>
    %68 = arith.select %21, %66, %67 : vector<16x128xi1>, vector<16x128xf32>
    %c64_i32_33 = arith.constant 64 : i32
    %69 = tpu.dynamic_rotate %65 by %c64_i32_33 dim 1 : vector<16x128xf32>, i32 -> vector<16x128xf32>
    %70 = arith.addf %68, %69 : vector<16x128xf32>
    %71 = arith.truncf %70 : vector<16x128xf32> to vector<16x128xbf16>
    %c0_34 = arith.constant 0 : index
    %c0_35 = arith.constant 0 : index
    %72 = vector.load %arg9[%c0_34, %c0_35] : memref<128x128xbf16, #tpu.memory_space<vmem>>, vector<128x128xbf16>
    %cst_36 = arith.constant dense<0.000000e+00> : vector<16x128xf32>
    %73 = tpu.matmul %71, %72, %cst_36 {dimension_numbers = #tpu.dot_dimension_numbers<[1], [0], [0], [1], [0, 0, 1, 1], [], []>} : vector<16x128xbf16>, vector<128x128xbf16>, vector<16x128xf32> -> vector<16x128xf32>
    %c0_37 = arith.constant 0 : index
    %c0_38 = arith.constant 0 : index
    %74 = vector.load %arg10[%c0_37, %c0_38] : memref<1x128xf32, #tpu.memory_space<vmem>>, vector<1x128xf32>
    %75 = vector.broadcast %74 : vector<1x128xf32> to vector<16x128xf32>
    %76 = arith.addf %73, %75 : vector<16x128xf32>
    %cst_39 = arith.constant 0.000000e+00 : f32
    %77 = vector.broadcast %cst_39 : f32 to vector<16x128xf32>
    %78 = arith.maximumf %76, %77 : vector<16x128xf32>
    %c2_i32_40 = arith.constant 2 : i32
    %79 = tpu.dynamic_rotate %78 by %c2_i32_40 dim 0 : vector<16x128xf32>, i32 -> vector<16x128xf32>
    %cst_41 = arith.constant 0.000000e+00 : f32
    %80 = vector.broadcast %cst_41 : f32 to vector<16x128xf32>
    %81 = arith.select %21, %79, %80 : vector<16x128xi1>, vector<16x128xf32>
    %c64_i32_42 = arith.constant 64 : i32
    %82 = tpu.dynamic_rotate %78 by %c64_i32_42 dim 1 : vector<16x128xf32>, i32 -> vector<16x128xf32>
    %83 = arith.addf %81, %82 : vector<16x128xf32>
    %84 = arith.truncf %83 : vector<16x128xf32> to vector<16x128xbf16>
    %c0_43 = arith.constant 0 : index
    %c0_44 = arith.constant 0 : index
    %85 = vector.load %arg11[%c0_43, %c0_44] : memref<128x128xbf16, #tpu.memory_space<vmem>>, vector<128x128xbf16>
    %cst_45 = arith.constant dense<0.000000e+00> : vector<16x128xf32>
    %86 = tpu.matmul %84, %85, %cst_45 {dimension_numbers = #tpu.dot_dimension_numbers<[1], [0], [0], [1], [0, 0, 1, 1], [], []>} : vector<16x128xbf16>, vector<128x128xbf16>, vector<16x128xf32> -> vector<16x128xf32>
    %c0_46 = arith.constant 0 : index
    %c0_47 = arith.constant 0 : index
    %87 = vector.load %arg12[%c0_46, %c0_47] : memref<1x128xf32, #tpu.memory_space<vmem>>, vector<1x128xf32>
    %88 = vector.broadcast %87 : vector<1x128xf32> to vector<16x128xf32>
    %89 = arith.addf %86, %88 : vector<16x128xf32>
    %cst_48 = arith.constant 0.000000e+00 : f32
    %90 = vector.broadcast %cst_48 : f32 to vector<16x128xf32>
    %91 = arith.maximumf %89, %90 : vector<16x128xf32>
    %92 = arith.addf %91, %65 : vector<16x128xf32>
    %cst_49 = arith.constant 0.000000e+00 : f32
    %93 = vector.broadcast %cst_49 : f32 to vector<16x128xf32>
    %94 = arith.maximumf %92, %93 : vector<16x128xf32>
    %95 = arith.truncf %94 : vector<16x128xf32> to vector<16x128xbf16>
    %c0_50 = arith.constant 0 : index
    %c0_51 = arith.constant 0 : index
    %96 = vector.load %arg13[%c0_50, %c0_51] : memref<128x128xbf16, #tpu.memory_space<vmem>>, vector<128x128xbf16>
    %cst_52 = arith.constant dense<0.000000e+00> : vector<16x128xf32>
    %97 = tpu.matmul %95, %96, %cst_52 {dimension_numbers = #tpu.dot_dimension_numbers<[1], [0], [0], [1], [0, 0, 1, 1], [], []>} : vector<16x128xbf16>, vector<128x128xbf16>, vector<16x128xf32> -> vector<16x128xf32>
    %c0_53 = arith.constant 0 : index
    %c0_54 = arith.constant 0 : index
    %98 = vector.load %arg14[%c0_53, %c0_54] : memref<1x128xf32, #tpu.memory_space<vmem>>, vector<1x128xf32>
    %99 = vector.broadcast %98 : vector<1x128xf32> to vector<16x128xf32>
    %100 = arith.addf %97, %99 : vector<16x128xf32>
    %101 = arith.truncf %100 : vector<16x128xf32> to vector<16x128xbf16>
    %c0_55 = arith.constant 0 : index
    %c0_56 = arith.constant 0 : index
    %102 = vector.load %arg15[%c0_55, %c0_56] : memref<16x128xbf16, #tpu.memory_space<vmem>>, vector<16x128xbf16>
    tpu.vector_store %arg15[%c0_55, %c0_56], %101 {strides = array<i32>} : memref<16x128xbf16, #tpu.memory_space<vmem>>, vector<16x128xbf16>,
    return
  }
  func.func @transform_0(%arg0: i32) -> (i32, i32) {
    %c0_i32 = arith.constant 0 : i32
    %c0_i32_0 = arith.constant 0 : i32
    return %arg0, %c0_i32 : i32, i32
  }
  func.func @transform_1(%arg0: i32) -> (i32, i32) {
    %c0_i32 = arith.constant 0 : i32
    %c0_i32_0 = arith.constant 0 : i32
    %c0_i32_1 = arith.constant 0 : i32
    return %c0_i32, %c0_i32_0 : i32, i32
  }
  func.func @transform_2(%arg0: i32) -> (i32, i32) {
    %c0_i32 = arith.constant 0 : i32
    %c0_i32_0 = arith.constant 0 : i32
    %c0_i32_1 = arith.constant 0 : i32
    return %c0_i32, %c0_i32_0 : i32, i32
  }
  func.func @transform_3(%arg0: i32) -> (i32, i32) {
    %c0_i32 = arith.constant 0 : i32
    %c0_i32_0 = arith.constant 0 : i32
    %c0_i32_1 = arith.constant 0 : i32
    return %c0_i32, %c0_i32_0 : i32, i32
  }
  func.func @transform_4(%arg0: i32) -> (i32, i32) {
    %c0_i32 = arith.constant 0 : i32
    %c0_i32_0 = arith.constant 0 : i32
    %c0_i32_1 = arith.constant 0 : i32
    return %c0_i32, %c0_i32_0 : i32, i32
  }
  func.func @transform_5(%arg0: i32) -> (i32, i32) {
    %c0_i32 = arith.constant 0 : i32
    %c0_i32_0 = arith.constant 0 : i32
    %c0_i32_1 = arith.constant 0 : i32
    return %c0_i32, %c0_i32_0 : i32, i32
  }
  func.func @transform_6(%arg0: i32) -> (i32, i32) {
    %c0_i32 = arith.constant 0 : i32
    %c0_i32_0 = arith.constant 0 : i32
    %c0_i32_1 = arith.constant 0 : i32
    return %c0_i32, %c0_i32_0 : i32, i32
  }
  func.func @transform_7(%arg0: i32) -> (i32, i32) {
    %c0_i32 = arith.constant 0 : i32
    %c0_i32_0 = arith.constant 0 : i32
    %c0_i32_1 = arith.constant 0 : i32
    return %c0_i32, %c0_i32_0 : i32, i32
  }
  func.func @transform_8(%arg0: i32) -> (i32, i32) {
    %c0_i32 = arith.constant 0 : i32
    %c0_i32_0 = arith.constant 0 : i32
    %c0_i32_1 = arith.constant 0 : i32
    return %c0_i32, %c0_i32_0 : i32, i32
  }
  func.func @transform_9(%arg0: i32) -> (i32, i32) {
    %c0_i32 = arith.constant 0 : i32
    %c0_i32_0 = arith.constant 0 : i32
    %c0_i32_1 = arith.constant 0 : i32
    return %c0_i32, %c0_i32_0 : i32, i32
  }
  func.func @transform_10(%arg0: i32) -> (i32, i32) {
    %c0_i32 = arith.constant 0 : i32
    %c0_i32_0 = arith.constant 0 : i32
    %c0_i32_1 = arith.constant 0 : i32
    return %c0_i32, %c0_i32_0 : i32, i32
  }
  func.func @transform_11(%arg0: i32) -> (i32, i32) {
    %c0_i32 = arith.constant 0 : i32
    %c0_i32_0 = arith.constant 0 : i32
    %c0_i32_1 = arith.constant 0 : i32
    return %c0_i32, %c0_i32_0 : i32, i32
  }
  func.func @transform_12(%arg0: i32) -> (i32, i32) {
    %c0_i32 = arith.constant 0 : i32
    %c0_i32_0 = arith.constant 0 : i32
    %c0_i32_1 = arith.constant 0 : i32
    return %c0_i32, %c0_i32_0 : i32, i32
  }
  func.func @transform_13(%arg0: i32) -> (i32, i32) {
    %c0_i32 = arith.constant 0 : i32
    %c0_i32_0 = arith.constant 0 : i32
    %c0_i32_1 = arith.constant 0 : i32
    return %c0_i32, %c0_i32_0 : i32, i32
  }
  func.func @transform_14(%arg0: i32) -> (i32, i32) {
    %c0_i32 = arith.constant 0 : i32
    %c0_i32_0 = arith.constant 0 : i32
    return %arg0, %c0_i32 : i32, i32
  }
}

</mosaic_0001>

<bundles_post_ra>
// kernel: traffic_tcn_forward.1
= control target key start
LH: loop header
LB: loop body
LE: loop exit
PB: predicated region body
PF: predicated region fallthrough
CT: control target
= control target key end

     0   :  { %s2920_s0 = inlined_call_operand.vmem [shape: s32[32,1], index: 0, kind: input, shape index: {}]   ;;  %s2921_s1 = inlined_call_operand.hbm [shape: bf16[128,128], index: 1, kind: input, shape index: {}]   ;;  %s2922_s2 = inlined_call_operand.hbm [shape: bf16[128,128], index: 2, kind: input, shape index: {}]   ;;  %s2923_s3 = inlined_call_operand.hbm [shape: f32[1,128], index: 3, kind: input, shape index: {}]   ;;  %s2924_s4 = inlined_call_operand.hbm [shape: bf16[128,128], index: 4, kind: input, shape index: {}]   ;;  %s2925_s5 = inlined_call_operand.hbm [shape: f32[1,128], index: 5, kind: input, shape index: {}]   ;;  %s2926_s6 = inlined_call_operand.hbm [shape: bf16[128,128], index: 6, kind: input, shape index: {}]   ;;  %s2927_s7 = inlined_call_operand.hbm [shape: f32[1,128], index: 7, kind: input, shape index: {}]   ;;  %s2928_s8 = inlined_call_operand.vmem [shape: bf16[128,128], index: 8, kind: input, shape index: {}]   ;;  %s2929_s9 = inlined_call_operand.vmem [shape: f32[1,128], index: 9, kind: input, shape index: {}]   ;;  %s2930_s10 = inlined_call_operand.hbm [shape: bf16[128,128], index: 10, kind: input, shape index: {}]   ;;  %s2931_s11 = inlined_call_operand.vmem [shape: f32[1,128], index: 11, kind: input, shape index: {}]   ;;  %s2932_s12 = inlined_call_operand.hbm [shape: bf16[128,128], index: 12, kind: input, shape index: {}]   ;;  %s2933_s13 = inlined_call_operand.vmem [shape: f32[1,128], index: 13, kind: input, shape index: {}]   ;;  %s2934_s14 = inlined_call_operand.vmem [shape: bf16[32,128], index: 14, kind: output, shape index: {}]  }
   0x1   :  { %2939 = sst [smem:[#allocation21_spill]] %s2929_s9 }
   0x2   :  { %2940 = sst [smem:[#allocation22_spill]] %s2931_s11 }
   0x3   :  { %2941 = sst [smem:[#allocation23_spill]] %s2933_s13 }
   0x4   :  { %2942 = sst [smem:[#allocation24_spill]] %s2934_s14 }
   0x5   :  { %19 = vsyncpa [#allocation3], 0 }
   0x6   :  { %20 = vsyncpa [#allocation5], 0 }
   0x7   :  { %21 = vsyncpa [#allocation8], 0 }
   0x8   :  { %22 = vsyncpa [#allocation11], 0 }
   0x9   :  { %23 = vsyncpa [#allocation14], 0  ;;  %s2487_s29 = smov 0  }
   0xa LB: > { %s2935_s30 = sadd.s32 4294967295, %s2393_s29   ;;  %p1648_p0 = scmp.ge.s32.totalorder %s2393_s29, 1  ;;  %s2393_s29 = sphi %s2487_s29, %s29_s29  }
   0xb   : > { %p359_p1 = scmp.lt.s32.totalorder %s2393_s29, 3  ;;  %p2497_p2 = scmp.eq.s32.totalorder %s2935_s30, 0 }
   0xc   : > { %s2395_s17 = smov [#allocation4]   ;;  %s2396_s19 = smov [#allocation7]  }
   0xd   : > { %s2943_s15 = scalar_select %p2497_p2, 1, 0 }
   0xe   : > { %p2501_p3 = pnand %p1648_p0, %p359_p1  ;;  %s384_s18 = sshll.u32 %s2395_s17, 4  ;;  %s2505_s18 = int_to_ptr.vmem [resolvable:$true] %s384_s18 }
   0xf   : > { %s408_s20 = sshll.u32 %s2396_s19, 4  ;;  %s2397_s22 = smov [#allocation10]   ;;  %s2509_s20 = int_to_ptr.vmem [resolvable:$true] %s408_s20 }
  0x10   : > { %s2944_s16 = scalar_select %p2501_p3, 1, 0 }
  0x11   : > { %p1987_p4 = pneg %p2501_p3  ;;  %s432_s23 = sshll.u32 %s2397_s22, 4  ;;  %s2517_s23 = int_to_ptr.vmem [resolvable:$true] %s432_s23 }
  0x12   : > { %s2398_s24 = smov [#allocation13]   ;;  %s2115_s28 = scalar_lea.hbm %s2922_s2, 1024 }
  0x13   : > { %p2513_p5 = pnand %p2497_p2, %p1987_p4  ;;  %s2519_s25 = sshll.u32 %s2398_s24, 4  ;;  %s463_s25 = int_to_ptr.vmem [resolvable:$true] %s2519_s25 }
  0x14   : > { %p2116_p6 = scmp.ne.s32.totalorder %s2922_s2, %s2115_s28  ;;  %p2122_p10 = scmp.lt.u32.totalorder %s2115_s28, %s2922_s2 }
  0x15   : > { %p2529_p7 = pneg %p2513_p5 }
  0x17   : > { %p2118_p8 = pnand %p2529_p7, %p2116_p6 }
  0x19   : > { %p2119_p9 = pneg %p2118_p8 }
  0x1b   : > { %p2124_p11 = pnand %p2122_p10, %p2119_p9 }
  0x1d   : > { %2127 = shalt.err (!%p2124_p11)
}
  0x1e   : > { %s2128_s26 = scalar_lea.vmem %s2505_s18, 1024  ;;  %p2136_p1 = scmp.lt.s32.totalorder %s2505_s18, %s2505_s18 }
  0x1f   : > { %p2129_p12 = scmp.ne.s32.totalorder %s2505_s18, %s2128_s26  ;;  %p2137_p4 = scmp.lt.s32.totalorder %s2128_s26, %s2128_s26 }
  0x21   : > { %p2131_p13 = pnand %p2129_p12, %p2529_p7  ;;  %p2138_p6 = por %p2137_p4, %p2136_p1 }
  0x23   : > { %p2132_p0 = pneg %p2131_p13 }
  0x25   : > { %p2139_p8 = pnand %p2138_p6, %p2132_p0 }
  0x27   : > { %2142 = shalt.err (!%p2139_p8)
}
  0x28   : > { %s2399_s27 = smov 64   ;;  %s2400_s28 = smov 4  }
  0x29   : > { %1993 = dma.hbm_to_vmem [thread:$0]  (!%p2513_p5), %s2922_s2, 1024, %s2505_s18, [#allocation5], %s2399_s27, %s2399_s27, %s2400_s28  }
  0x2a   : > { %s2143_s26 = scalar_lea.hbm %s2924_s4, 1024 }
  0x2b   : > { %p2144_p9 = scmp.ne.s32.totalorder %s2924_s4, %s2143_s26  ;;  %p2150_p12 = scmp.lt.u32.totalorder %s2143_s26, %s2924_s4 }
  0x2d   : > { %p2146_p10 = pnand %p2144_p9, %p2529_p7 }
  0x2f   : > { %p2147_p11 = pneg %p2146_p10 }
  0x31   : > { %p2152_p13 = pnand %p2150_p12, %p2147_p11 }
  0x33   : > { %2155 = shalt.err (!%p2152_p13)
}
  0x34   : > { %s2156_s18 = scalar_lea.vmem %s2509_s20, 1024  ;;  %p2164_p6 = scmp.lt.s32.totalorder %s2509_s20, %s2509_s20 }
  0x35   : > { %p2157_p0 = scmp.ne.s32.totalorder %s2509_s20, %s2156_s18  ;;  %p2165_p8 = scmp.lt.s32.totalorder %s2156_s18, %s2156_s18 }
  0x37   : > { %p2159_p1 = pnand %p2157_p0, %p2529_p7  ;;  %p2166_p9 = por %p2165_p8, %p2164_p6 }
  0x39   : > { %p2160_p4 = pneg %p2159_p1 }
  0x3b   : > { %p2167_p10 = pnand %p2166_p9, %p2160_p4 }
  0x3d   : > { %2170 = shalt.err (!%p2167_p10)
}
  0x3e   : > { %1999 = dma.hbm_to_vmem [thread:$0]  (!%p2513_p5), %s2924_s4, 1024, %s2509_s20, [#allocation8], %s2399_s27, %s2399_s27, %s2400_s28  }
  0x3f   : > { %s2171_s17 = scalar_lea.hbm %s2926_s6, 1024 }
  0x40   : > { %p2172_p11 = scmp.ne.s32.totalorder %s2926_s6, %s2171_s17  ;;  %p2178_p0 = scmp.lt.u32.totalorder %s2171_s17, %s2926_s6 }
  0x42   : > { %p2174_p12 = pnand %p2172_p11, %p2529_p7 }
  0x44   : > { %p2175_p13 = pneg %p2174_p12 }
  0x46   : > { %p2180_p1 = pnand %p2178_p0, %p2175_p13 }
  0x48   : > { %2183 = shalt.err (!%p2180_p1)
}
  0x49   : > { %s2184_s20 = scalar_lea.vmem %s2517_s23, 1024  ;;  %p2192_p9 = scmp.lt.s32.totalorder %s2517_s23, %s2517_s23 }
  0x4a   : > { %p2185_p4 = scmp.ne.s32.totalorder %s2517_s23, %s2184_s20  ;;  %p2193_p10 = scmp.lt.s32.totalorder %s2184_s20, %s2184_s20 }
  0x4c   : > { %p2187_p6 = pnand %p2185_p4, %p2529_p7  ;;  %p2194_p11 = por %p2193_p10, %p2192_p9 }
  0x4e   : > { %p2188_p8 = pneg %p2187_p6 }
  0x50   : > { %p2195_p12 = pnand %p2194_p11, %p2188_p8 }
  0x52   : > { %2198 = shalt.err (!%p2195_p12)
}
  0x53   : > { %2005 = dma.hbm_to_vmem [thread:$0]  (!%p2513_p5), %s2926_s6, 1024, %s2517_s23, [#allocation11], %s2399_s27, %s2399_s27, %s2400_s28  }
  0x54   : > { %s2199_s14 = scalar_lea.hbm %s2930_s10, 1024 }
  0x55   : > { %p2200_p13 = scmp.ne.s32.totalorder %s2930_s10, %s2199_s14  ;;  %p2206_p4 = scmp.lt.u32.totalorder %s2199_s14, %s2930_s10 }
  0x57   : > { %p2202_p0 = pnand %p2200_p13, %p2529_p7 }
  0x59   : > { %p2203_p1 = pneg %p2202_p0 }
  0x5b   : > { %p2208_p6 = pnand %p2206_p4, %p2203_p1 }
  0x5d   : > { %2211 = shalt.err (!%p2208_p6)
}
  0x5e   : > { %s2212_s26 = scalar_lea.vmem %s463_s25, 1024  ;;  %p2220_p11 = scmp.lt.s32.totalorder %s463_s25, %s463_s25 }
  0x5f   : > { %p2213_p8 = scmp.ne.s32.totalorder %s463_s25, %s2212_s26  ;;  %p2221_p12 = scmp.lt.s32.totalorder %s2212_s26, %s2212_s26 }
  0x61   : > { %p2215_p9 = pnand %p2213_p8, %p2529_p7  ;;  %p2222_p2 = por %p2221_p12, %p2220_p11 }
  0x63   : > { %p2216_p10 = pneg %p2215_p9 }
  0x65   : > { %p2223_p3 = pnand %p2222_p2, %p2216_p10 }
  0x67   : > { %2226 = shalt.err (!%p2223_p3)
}
  0x68   : > { %2011 = dma.hbm_to_vmem [thread:$0]  (!%p2513_p5), %s2930_s10, 1024, %s463_s25, [#allocation14], %s2399_s27, %s2399_s27, %s2400_s28  }
  0x69   : > { %s2401_s18 = smov [#allocation2]   ;;  %s2402_s11 = smov [#allocation6]  }
  0x6a   : > { %s371_s9 = sshll.u32 %s2401_s18, 4  ;;  %s398_s13 = sshll.u32 %s2402_s11, 4  ;;  %s372_s9 = int_to_ptr.vmem [resolvable:$true] %s371_s9  ;;  %s399_s13 = int_to_ptr.vmem [resolvable:$true] %s398_s13 }
  0x6b   : > { %s2227_s19 = scalar_lea.hbm %s2921_s1, 1024 }
  0x6c   : > { %p2228_p2 = scmp.ne.s32.totalorder %s2921_s1, %s2227_s19  ;;  %p2234_p0 = scmp.lt.u32.totalorder %s2227_s19, %s2921_s1 }
  0x6e   : > { %p2230_p3 = pnand %p2228_p2, %p2529_p7 }
  0x70   : > { %p2231_p13 = pneg %p2230_p3 }
  0x72   : > { %p2236_p1 = pnand %p2234_p0, %p2231_p13 }
  0x74   : > { %2239 = shalt.err (!%p2236_p1)
}
  0x75   : > { %s2240_s25 = scalar_lea.vmem %s372_s9, 1024  ;;  %p2248_p9 = scmp.lt.s32.totalorder %s372_s9, %s372_s9 }
  0x76   : > { %p2241_p4 = scmp.ne.s32.totalorder %s372_s9, %s2240_s25  ;;  %p2249_p10 = scmp.lt.s32.totalorder %s2240_s25, %s2240_s25 }
  0x78   : > { %p2243_p6 = pnand %p2241_p4, %p2529_p7  ;;  %p2250_p11 = por %p2249_p10, %p2248_p9 }
  0x7a   : > { %p2244_p8 = pneg %p2243_p6 }
  0x7c   : > { %p2251_p12 = pnand %p2250_p11, %p2244_p8 }
  0x7e   : > { %2254 = shalt.err (!%p2251_p12)
}
  0x7f   : > { %1990 = dma.hbm_to_vmem [thread:$0]  (!%p2513_p5), %s2921_s1, 1024, %s372_s9, [#allocation3], %s2399_s27, %s2399_s27, %s2400_s28  }
  0x80   : > { %s2255_s17 = scalar_lea.hbm %s2923_s3, 16 }
  0x81   : > { %p2256_p2 = scmp.ne.s32.totalorder %s2923_s3, %s2255_s17  ;;  %p2262_p0 = scmp.lt.u32.totalorder %s2255_s17, %s2923_s3 }
  0x83   : > { %p2258_p3 = pnand %p2256_p2, %p2529_p7 }
  0x85   : > { %p2259_p13 = pneg %p2258_p3 }
  0x87   : > { %p2264_p1 = pnand %p2262_p0, %p2259_p13 }
  0x89   : > { %2267 = shalt.err (!%p2264_p1)
}
  0x8a   : > { %s2268_s23 = scalar_lea.vmem %s399_s13, 16  ;;  %s2275_s9 = scalar_lea.vmem %s399_s13, 32 }
  0x8b   : > { %p2269_p4 = scmp.ne.s32.totalorder %s399_s13, %s2268_s23  ;;  %p2276_p9 = scmp.lt.s32.totalorder %s399_s13, %s399_s13 }
  0x8c   : > { %p2277_p10 = scmp.lt.s32.totalorder %s2275_s9, %s2268_s23 }
  0x8d   : > { %p2271_p6 = pnand %p2269_p4, %p2529_p7 }
  0x8e   : > { %p2278_p11 = por %p2277_p10, %p2276_p9 }
  0x8f   : > { %p2272_p8 = pneg %p2271_p6 }
  0x91   : > { %p2279_p12 = pnand %p2278_p11, %p2272_p8 }
  0x93   : > { %2282 = shalt.err (!%p2279_p12)
}
  0x94   : > { %1996 = dma.hbm_to_vmem [thread:$0]  (!%p2513_p5), %s2923_s3, 16, %s399_s13, [#allocation5]  }
  0x95   : > { %s2403_s18 = smov [#allocation9]   ;;  %s2404_s14 = smov [#allocation12]  }
  0x96   : > { %s422_s11 = sshll.u32 %s2403_s18, 4  ;;  %s446_s17 = sshll.u32 %s2404_s14, 4  ;;  %s423_s11 = int_to_ptr.vmem [resolvable:$true] %s422_s11  ;;  %s447_s17 = int_to_ptr.vmem [resolvable:$true] %s446_s17 }
  0x97   : > { %s2283_s24 = scalar_lea.hbm %s2925_s5, 16 }
  0x98   : > { %p2284_p2 = scmp.ne.s32.totalorder %s2925_s5, %s2283_s24  ;;  %p2290_p0 = scmp.lt.u32.totalorder %s2283_s24, %s2925_s5 }
  0x9a   : > { %p2286_p3 = pnand %p2284_p2, %p2529_p7 }
  0x9c   : > { %p2287_p13 = pneg %p2286_p3 }
  0x9e   : > { %p2292_p1 = pnand %p2290_p0, %p2287_p13 }
  0xa0   : > { %2295 = shalt.err (!%p2292_p1)
}
  0xa1   : > { %s2296_s13 = scalar_lea.vmem %s423_s11, 16  ;;  %s2303_s20 = scalar_lea.vmem %s423_s11, 32 }
  0xa2   : > { %p2297_p4 = scmp.ne.s32.totalorder %s423_s11, %s2296_s13  ;;  %p2304_p9 = scmp.lt.s32.totalorder %s423_s11, %s423_s11 }
  0xa3   : > { %p2305_p10 = scmp.lt.s32.totalorder %s2303_s20, %s2296_s13 }
  0xa4   : > { %p2299_p6 = pnand %p2297_p4, %p2529_p7 }
  0xa5   : > { %p2306_p11 = por %p2305_p10, %p2304_p9 }
  0xa6   : > { %p2300_p8 = pneg %p2299_p6 }
  0xa8   : > { %p2307_p12 = pnand %p2306_p11, %p2300_p8 }
  0xaa   : > { %2310 = shalt.err (!%p2307_p12)
}
  0xab   : > { %2002 = dma.hbm_to_vmem [thread:$0]  (!%p2513_p5), %s2925_s5, 16, %s423_s11, [#allocation8]  }
  0xac   : > { %s2311_s24 = scalar_lea.hbm %s2927_s7, 16 }
  0xad   : > { %p2312_p2 = scmp.ne.s32.totalorder %s2927_s7, %s2311_s24  ;;  %p2318_p0 = scmp.lt.u32.totalorder %s2311_s24, %s2927_s7 }
  0xaf   : > { %p2314_p3 = pnand %p2312_p2, %p2529_p7 }
  0xb1   : > { %p2315_p13 = pneg %p2314_p3 }
  0xb3   : > { %p2320_p1 = pnand %p2318_p0, %p2315_p13 }
  0xb5   : > { %2323 = shalt.err (!%p2320_p1)
}
  0xb6   : > { %s2324_s13 = scalar_lea.vmem %s447_s17, 16  ;;  %s2331_s11 = scalar_lea.vmem %s447_s17, 32 }
  0xb7   : > { %p2325_p4 = scmp.ne.s32.totalorder %s447_s17, %s2324_s13  ;;  %p2332_p9 = scmp.lt.s32.totalorder %s447_s17, %s447_s17 }
  0xb8   : > { %p2333_p10 = scmp.lt.s32.totalorder %s2331_s11, %s2324_s13 }
  0xb9   : > { %p2327_p6 = pnand %p2325_p4, %p2529_p7 }
  0xba   : > { %p2334_p11 = por %p2333_p10, %p2332_p9 }
  0xbb   : > { %p2328_p8 = pneg %p2327_p6 }
  0xbd   : > { %p2335_p12 = pnand %p2334_p11, %p2328_p8 }
  0xbf   : > { %2338 = shalt.err (!%p2335_p12)
}
  0xc0   : > { %2008 = dma.hbm_to_vmem [thread:$0]  (!%p2513_p5), %s2927_s7, 16, %s447_s17, [#allocation11]  }
  0xc1   : > { %s2405_s14 = smov [#allocation15]   ;;  %s2339_s26 = scalar_lea.hbm %s2932_s12, 1024 }
  0xc2   : > { %s478_s19 = sshll.u32 %s2405_s14, 4  ;;  %p2340_p2 = scmp.ne.s32.totalorder %s2932_s12, %s2339_s26  ;;  %s479_s19 = int_to_ptr.vmem [resolvable:$true] %s478_s19 }
  0xc3   : > { %p2346_p0 = scmp.lt.u32.totalorder %s2339_s26, %s2932_s12 }
  0xc4   : > { %p2342_p3 = pnand %p2340_p2, %p2529_p7 }
  0xc6   : > { %p2343_p13 = pneg %p2342_p3 }
  0xc8   : > { %p2348_p1 = pnand %p2346_p0, %p2343_p13 }
  0xca   : > { %2351 = shalt.err (!%p2348_p1)
}
  0xcb   : > { %s2352_s17 = scalar_lea.vmem %s479_s19, 1024  ;;  %p2360_p9 = scmp.lt.s32.totalorder %s479_s19, %s479_s19 }
  0xcc   : > { %p2353_p4 = scmp.ne.s32.totalorder %s479_s19, %s2352_s17  ;;  %p2361_p10 = scmp.lt.s32.totalorder %s2352_s17, %s2352_s17 }
  0xce   : > { %p2355_p6 = pnand %p2353_p4, %p2529_p7  ;;  %p2362_p11 = por %p2361_p10, %p2360_p9 }
  0xd0   : > { %p2356_p8 = pneg %p2355_p6 }
  0xd2   : > { %p2363_p12 = pnand %p2362_p11, %p2356_p8 }
  0xd4   : > { %2366 = shalt.err (!%p2363_p12)
}
  0xd5   : > { %2014 = dma.hbm_to_vmem [thread:$0]  (!%p2513_p5), %s2932_s12, 1024, %s479_s19, [#allocation14], %s2399_s27, %s2399_s27, %s2400_s28  }
  0xd6   : > { %p2947_p2 = scmp.ne.s32.totalorder %s2944_s16, 0 }
  0xd7   : > { %p2948_p7 = scmp.ne.s32.totalorder (!%p2947_p2), %s2943_s15, 0 }
  0xd8   : > { %506 = sbr.rel (%p2947_p2) target bundleno = 2167 (0x877), region = 76 }
  0xdf   : > { %2372 = dma.done.wait (%p2948_p7), [#allocation3], 1024  }
  0xe0   : > { %2374 = vsyncadd (%p2948_p7), [#allocation3], 4294966272 }
  0xe1   : > { %2376 = dma.done.wait (%p2948_p7), [#allocation5], 1040  }
  0xe2   : > { %2378 = vsyncadd (%p2948_p7), [#allocation5], 4294966256 }
  0xe3   : > { %2380 = dma.done.wait (%p2948_p7), [#allocation8], 1040  }
  0xe4   : > { %2382 = vsyncadd (%p2948_p7), [#allocation8], 4294966256 }
  0xe5   : > { %2384 = dma.done.wait (%p2948_p7), [#allocation11], 1040  }
  0xe6   : > { %2386 = vsyncadd (%p2948_p7), [#allocation11], 4294966256 }
  0xe7   : > { %2388 = dma.done.wait (%p2948_p7), [#allocation14], 2048  }
  0xe8   : > { %2390 = vsyncadd (%p2948_p7), [#allocation14], 4294965248  ;;  %s2949_s30 = sadd.s32 4294967295, %s2393_s29   ;;  %v2406_v0 = vmov 0   ;;  %v2407_v1 = vmov 0.0   ;;  %v2059_v3 = vld [vmem:[#allocation2] sm:$0xff]   ;;  %v597_v12 = vlaneseq }
  0xe9   : > { %s1669_s16 = sshll.u32 %s2949_s30, 1  ;;  %2058 = vset.pattern.permute.xlu0 %v2406_v0  ;;  %1811 = vmatprep.subr.bf16.mxu0 %v2407_v1  ;;  %v2060_v5 = vld [vmem:[#allocation2 + $0x8] sm:$0xff]   ;;  %vm2408_vm0 = vmmov 0   ;;  %v2061_v6 = vld [vmem:[#allocation2 + $0x10] sm:$0xff]   ;;  %v2062_v7 = vld [vmem:[#allocation2 + $0x18] sm:$0xff]   ;;  %s2410_s18 = smov 32  }
  0xea   : > { %p585_p5 = scmp.lt.s32.totalorder %s1669_s16, 3  ;;  %1831 = vmatprep.subr.bf16.mxu1 %v2407_v1  ;;  %1812 = vmatpush3.bf16.msra.mxu0 %v2059_v3  ;;  %v2063_v8 = vld [vmem:[#allocation2 + $0x20] sm:$0xff]   ;;  %v2064_v9 = vld [vmem:[#allocation2 + $0x28] sm:$0xff]   ;;  %v2065_v10 = vld [vmem:[#allocation2 + $0x30] sm:$0xff]   ;;  %v625_v14 = vand.u32 127, %v597_v12  ;;  %v2777_v25 = vshrl.u32 %v597_v12, 7 }
  0xeb   : > { %1813 = vmatprep.subr.bf16.mxu0 %v2407_v1  ;;  %1827 = vmatprep.mubr.msk.bf16.mxu0 %vm2408_vm0, %v2407_v1  ;;  %v2066_v11 = vld [vmem:[#allocation2 + $0x38] sm:$0xff]   ;;  %v2409_v16 = vmov 1.0|1.0   ;;  %v2067_v17 = vld [vmem:[#allocation4] sm:$0xff]   ;;  %v2068_v18 = vld [vmem:[#allocation4 + $0x8] sm:$0xff]   ;;  %s2411_s14 = smov 64  }
  0xec   : > { %s2959_s16 = smov (!%p585_p5, %s1669_s16), 3  ;;  %1847 = vmatprep.mubr.msk.bf16.mxu1 %vm2408_vm0, %v2407_v1  ;;  %1832 = vmatpush3.bf16.msra.mxu1 %v2067_v17  ;;  %v2069_v19 = vld [vmem:[#allocation4 + $0x10] sm:$0xff]   ;;  %v2070_v20 = vld [vmem:[#allocation4 + $0x18] sm:$0xff]   ;;  %v2071_v21 = vld [vmem:[#allocation4 + $0x20] sm:$0xff]   ;;  %vm750_vm4 = vcmp.lt.s32.totalorder %v2777_v25, 1  ;;  %v604_v35 = vand.u32 15, %v2777_v25 }
  0xed   : > { %s1670_s21 = sshll.u32 %s2959_s16, 3  ;;  %1833 = vmatprep.subr.bf16.mxu1 %v2407_v1  ;;  %v2072_v22 = vld [vmem:[#allocation4 + $0x28] sm:$0xff]   ;;  %v2073_v23 = vld [vmem:[#allocation4 + $0x30] sm:$0xff]   ;;  %v2074_v24 = vld [vmem:[#allocation4 + $0x38] sm:$0xff]   ;;  %vm1122_vm6 = vcmp.lt.s32.totalorder %v2777_v25, 2  ;;  %s2954_s22 = sld [smem:[#allocation21_spill]] }
  0xee   : > { %s588_s15 = scalar_lea.vmem %s2920_s0, %s1670_s21  ;;  %1814 = vmatpush3.bf16.msra.mxu0 %v2060_v5  ;;  %vm2787_vm5 = vcmp.ge.s32.totalorder %v604_v35, 1  ;;  %v2075_v42 = vld [vmem:[#allocation10] sm:$0xff]   ;;  %v2076_v44 = vld [vmem:[#allocation10 + $0x8] sm:$0xff]   ;;  %v2077_v45 = vld [vmem:[#allocation10 + $0x10] sm:$0xff]   ;;  %vm2868_vm7 = vcmp.ge.s32.totalorder %v604_v35, 2  ;;  %s2955_s26 = sld [smem:[#allocation22_spill]] }
  0xef   : > { %v630_v2 = vld [vmem:[%s588_s15] sm:$0xff]  ;;  %v631_v4 = vld [vmem:[%s588_s15 + $0x8] sm:$0xff]  ;;  %1815 = vmatprep.subr.bf16.mxu0 %v2407_v1  ;;  %v2081_v49 = vld [vmem:[#allocation10 + $0x30] sm:$0xff]   ;;  %s2956_s25 = sld [smem:[#allocation23_spill]]  ;;  %s1672_s13 = sshll.u32 %s2959_s16, 2 }
  0xf0   : > { %633 = vperm.xlu0 %2058, %v630_v2   ;;  %1834 = vmatpush3.bf16.msra.mxu1 %v2068_v18  ;;  %v2078_v46 = vld [vmem:[#allocation10 + $0x18] sm:$0xff]   ;;  %v2079_v47 = vld [vmem:[#allocation10 + $0x20] sm:$0xff]   ;;  %v2080_v48 = vld [vmem:[#allocation10 + $0x28] sm:$0xff]   ;;  %s2957_s20 = sld [smem:[#allocation24_spill]] }
  0xf1   : > { %1835 = vmatprep.subr.bf16.mxu1 %v2407_v1  ;;  %v2082_v50 = vld [vmem:[#allocation10 + $0x38] sm:$0xff]   ;;  %v2084_v52 = vld [vmem:[#allocation7 + $0x8] sm:$0xff]   ;;  %v2085_v53 = vld [vmem:[#allocation7 + $0x10] sm:$0xff]  }
  0xf2   : > { %1816 = vmatpush3.bf16.msra.mxu0 %v2061_v6  ;;  %v2083_v51 = vld [vmem:[#allocation7] sm:$0xff]   ;;  %v2086_v54 = vld [vmem:[#allocation7 + $0x18] sm:$0xff]   ;;  %v2088_v56 = vld [vmem:[#allocation7 + $0x28] sm:$0xff]  }
  0xf3   : > { %1817 = vmatprep.subr.bf16.mxu0 %v2407_v1  ;;  %v2087_v55 = vld [vmem:[#allocation7 + $0x20] sm:$0xff]   ;;  %v2089_v57 = vld [vmem:[#allocation7 + $0x30] sm:$0xff]   ;;  %v2090_v58 = vld [vmem:[#allocation7 + $0x38] sm:$0xff]  }
  0xf4   : > { %636 = vperm.xlu0 %2058, %v631_v4   ;;  %1836 = vmatpush3.bf16.msra.mxu1 %v2069_v19  ;;  %v1683_v59 = vld [vmem:[#allocation6] ss:$0 sm:$0xff]  ;;  %v2099_v35 = vld [vmem:[#allocation13] sm:$0xff]   ;;  %v2112_v25 = vld [vmem:[#allocation15 + $0x28] sm:$0xff]  }
  0xf5   : > { %1837 = vmatprep.subr.bf16.mxu1 %v2407_v1  ;;  %v2091_v19 = vld [vmem:[%s2928_s8] sm:$0xff]  }
  0xf6   : > { %1818 = vmatpush3.bf16.msra.mxu0 %v2062_v7  ;;  %s594_s30 = scalar_lea.vmem %s2957_s20, %s1672_s13 }
  0xf7   : > { %1819 = vmatprep.subr.bf16.mxu0 %v2407_v1 }
  0xf8   : > { %1838 = vmatpush3.bf16.msra.mxu1 %v2070_v20  ;;  %v2092_v20 = vld [vmem:[%s2928_s8 + $0x8] sm:$0xff]  }
  0xf9   : > { %1839 = vmatprep.subr.bf16.mxu1 %v2407_v1 }
  0xfa   : > { %1820 = vmatpush3.bf16.msra.mxu0 %v2063_v8 }
  0xfb   : > { %1821 = vmatprep.subr.bf16.mxu0 %v2407_v1 }
  0xfc   : > { %1840 = vmatpush3.bf16.msra.mxu1 %v2071_v21  ;;  %v2093_v21 = vld [vmem:[%s2928_s8 + $0x10] sm:$0xff]  }
  0xfd   : > { %1841 = vmatprep.subr.bf16.mxu1 %v2407_v1 }
  0xfe   : > { %1822 = vmatpush3.bf16.msra.mxu0 %v2064_v9 }
  0xff   : > { %1823 = vmatprep.subr.bf16.mxu0 %v2407_v1 }
 0x100   : > { %1842 = vmatpush3.bf16.msra.mxu1 %v2072_v22  ;;  %v2094_v22 = vld [vmem:[%s2928_s8 + $0x18] sm:$0xff]  }
 0x101   : > { %1843 = vmatprep.subr.bf16.mxu1 %v2407_v1 }
 0x102   : > { %1824 = vmatpush3.bf16.msra.mxu0 %v2065_v10 }
 0x103   : > { %1825 = vmatprep.subr.bf16.mxu0 %v2407_v1 }
 0x104   : > { %1844 = vmatpush3.bf16.msra.mxu1 %v2073_v23  ;;  %v2095_v23 = vld [vmem:[%s2928_s8 + $0x20] sm:$0xff]  }
 0x105   : > { %1845 = vmatprep.subr.bf16.mxu1 %v2407_v1 }
 0x106   : > { %1826 = vmatpush3.bf16.msra.mxu0 %v2066_v11 }
 0x107   : > { %1851 = vmatprep.subr.bf16.mxu0 %v2407_v1 }
 0x108   : > { %1846 = vmatpush3.bf16.msra.mxu1 %v2074_v24  ;;  %v2096_v24 = vld [vmem:[%s2928_s8 + $0x28] sm:$0xff]  }
 0x109   : > { %1871 = vmatprep.subr.bf16.mxu1 %v2407_v1 }
 0x16f   : > { %v634_v13 = vpop.permute.xlu0 %633 }
 0x170   : > { %vm638_vm1 = vcmp.eq.s32.totalorder %v625_v14, %v634_v13 }
 0x173   : > { %v637_v15 = vpop.permute.xlu0 %636 }
 0x174   : > { %vm639_vm2 = vcmp.eq.s32.totalorder %v625_v14, %v637_v15 }
 0x175   : > { %vm1681_vm3 = vmpackc.low %vm639_vm2, %vm638_vm1 }
 0x176   : > { %1828 = vmatmul.mubr.msk.bf16.vlgmr.msra.gmra.mrb[0].mxu0 %vm1681_vm3, %v2409_v16 }
 0x177   : > { %1867 = vmatprep.mubr.msk.bf16.mxu0 %vm2408_vm0, %v2407_v1  ;;  %1852 = vmatpush3.bf16.msra.mxu0 %v2083_v51 }
 0x178   : > { %1853 = vmatprep.subr.bf16.mxu0 %v2407_v1 }
 0x17b   : > { %1854 = vmatpush3.bf16.msra.mxu0 %v2084_v52 }
 0x17c   : > { %1855 = vmatprep.subr.bf16.mxu0 %v2407_v1 }
 0x17f   : > { %1856 = vmatpush3.bf16.msra.mxu0 %v2085_v53 }
 0x180   : > { %1857 = vmatprep.subr.bf16.mxu0 %v2407_v1 }
 0x183   : > { %1858 = vmatpush3.bf16.msra.mxu0 %v2086_v54 }
 0x184   : > { %1859 = vmatprep.subr.bf16.mxu0 %v2407_v1 }
 0x187   : > { %1860 = vmatpush3.bf16.msra.mxu0 %v2087_v55 }
 0x188   : > { %1861 = vmatprep.subr.bf16.mxu0 %v2407_v1 }
 0x18b   : > { %1862 = vmatpush3.bf16.msra.mxu0 %v2088_v56  ;;  %v2100_v56 = vld [vmem:[#allocation13 + $0x8] sm:$0xff]  }
 0x18c   : > { %1863 = vmatprep.subr.bf16.mxu0 %v2407_v1 }
 0x18f   : > { %1864 = vmatpush3.bf16.msra.mxu0 %v2089_v57  ;;  %v2101_v57 = vld [vmem:[#allocation13 + $0x10] sm:$0xff]  }
 0x190   : > { %1865 = vmatprep.subr.bf16.mxu0 %v2407_v1 }
 0x193   : > { %1866 = vmatpush3.bf16.msra.mxu0 %v2090_v58  ;;  %v2102_v58 = vld [vmem:[#allocation13 + $0x18] sm:$0xff]  }
 0x194   : > { %1891 = vmatprep.subr.bf16.mxu0 %v2407_v1 }
 0x249   : > { %v741_v26 = vpop.f32.mrb[0].mxu0 }
 0x24a   : > { %755 = vrot.lane.b32.xlu1 %v741_v26, %s2410_s18  ;;  %v1829_v27 = vpop.f32.mrb[1].mxu0  ;;  %v748_v29 = vrot.slane %v741_v26, 7 }
 0x24b   : > { %v744_v28 = vpop.f32.mrb[2].mxu0  ;;  %v1692_v27 = vld [vmem:[#allocation9] ss:$0 sm:$0xff] }
 0x24c   : > { %v749_v30 = vrot.slane %v744_v28, 7  ;;  %v1003_v31 = vpack.c.bf16 %v744_v28, %v741_v26  ;;  %v1830_v32 = vpop.f32.mrb[3].mxu0  ;;  %v2097_v26 = vld [vmem:[%s2928_s8 + $0x30] sm:$0xff]  }
 0x24e   : > { %757 = vrot.lane.b32.xlu1 %v744_v28, %s2410_s18  ;;  %v752_v33 = vsel %vm750_vm4, %v749_v30, %v748_v29  ;;  %v751_v34 = vsel %vm750_vm4, %v748_v29, %v749_v30  ;;  %v2098_v28 = vld [vmem:[%s2928_s8 + $0x38] sm:$0xff]   ;;  %v1701_v29 = vld [vmem:[#allocation12] ss:$0 sm:$0xff] }
 0x24f   : > { %v753_v38 = vsel %vm2787_vm5, %v752_v33, 0.0 }
 0x2bc   : > { %v756_v36 = vpop.permute.xlu1 %755 }
 0x2bd   : > { %v759_v40 = vadd.f32 %v756_v36, %v753_v38 }
 0x2c0   : > { %v758_v39 = vpop.permute.xlu1 %757 }
 0x2c1   : > { %v760_v41 = vadd.f32 %v758_v39, %v751_v34 }
 0x2c3   : > { %v761_v43 = vpack.c.bf16 %v760_v41, %v759_v40 }
 0x2c5   : > { %1848 = vmatmul.mubr.bf16.vlgmr.msra.gmra.mrb[0].mxu1 %v761_v43 }
 0x2c6   : > { %1872 = vmatpush3.bf16.msra.mxu1 %v2075_v42  ;;  %1887 = vmatprep.mubr.msk.bf16.mxu1 %vm2408_vm0, %v2407_v1 }
 0x2c7   : > { %1873 = vmatprep.subr.bf16.mxu1 %v2407_v1 }
 0x2ca   : > { %1874 = vmatpush3.bf16.msra.mxu1 %v2076_v44 }
 0x2cb   : > { %1875 = vmatprep.subr.bf16.mxu1 %v2407_v1 }
 0x2ce   : > { %1876 = vmatpush3.bf16.msra.mxu1 %v2077_v45 }
 0x2cf   : > { %1877 = vmatprep.subr.bf16.mxu1 %v2407_v1 }
 0x2d2   : > { %1878 = vmatpush3.bf16.msra.mxu1 %v2078_v46 }
 0x2d3   : > { %1879 = vmatprep.subr.bf16.mxu1 %v2407_v1 }
 0x2d6   : > { %1880 = vmatpush3.bf16.msra.mxu1 %v2079_v47 }
 0x2d7   : > { %1881 = vmatprep.subr.bf16.mxu1 %v2407_v1 }
 0x2da   : > { %1882 = vmatpush3.bf16.msra.mxu1 %v2080_v48 }
 0x2db   : > { %1883 = vmatprep.subr.bf16.mxu1 %v2407_v1 }
 0x2de   : > { %1884 = vmatpush3.bf16.msra.mxu1 %v2081_v49 }
 0x2df   : > { %1885 = vmatprep.subr.bf16.mxu1 %v2407_v1 }
 0x2e2   : > { %1886 = vmatpush3.bf16.msra.mxu1 %v2082_v50 }
 0x2e3   : > { %1911 = vmatprep.subr.bf16.mxu1 %v2407_v1 }
 0x2e5   : > { %1888 = vmatmul.mubr.bf16.vlgmr.msra.gmra.mrb[4].mxu1 %v1003_v31 }
 0x2e6   : > { %1927 = vmatprep.mubr.msk.bf16.mxu1 %vm2408_vm0, %v2407_v1  ;;  %1912 = vmatpush3.bf16.msra.mxu1 %v2099_v35 }
 0x2e7   : > { %1913 = vmatprep.subr.bf16.mxu1 %v2407_v1 }
 0x2ea   : > { %1914 = vmatpush3.bf16.msra.mxu1 %v2100_v56 }
 0x2eb   : > { %1915 = vmatprep.subr.bf16.mxu1 %v2407_v1 }
 0x2ee   : > { %1916 = vmatpush3.bf16.msra.mxu1 %v2101_v57 }
 0x2ef   : > { %1917 = vmatprep.subr.bf16.mxu1 %v2407_v1 }
 0x2f2   : > { %1918 = vmatpush3.bf16.msra.mxu1 %v2102_v58 }
 0x2f3   : > { %1919 = vmatprep.subr.bf16.mxu1 %v2407_v1 }
 0x398   : > { %v867_v60 = vpop.f32.mrb[0].mxu1 }
 0x399   : > { %v868_v61 = vadd.f32 %v1683_v59, %v867_v60  ;;  %v1849_v62 = vpop.f32.mrb[1].mxu1  ;;  %v2104_v60 = vld [vmem:[#allocation13 + $0x28] sm:$0xff]  }
 0x39a   : > { %v870_v63 = vpop.f32.mrb[2].mxu1  ;;  %v2106_v62 = vld [vmem:[#allocation13 + $0x38] sm:$0xff]  }
 0x39b   : > { %v874_v0 = vmax.f32 %v868_v61, 0.0  ;;  %v871_v2 = vadd.f32 %v1683_v59, %v870_v63  ;;  %v1850_v3 = vpop.f32.mrb[3].mxu1  ;;  %v2103_v59 = vld [vmem:[#allocation13 + $0x20] sm:$0xff]   ;;  %v2105_v61 = vld [vmem:[#allocation13 + $0x30] sm:$0xff]   ;;  %v1710_v63 = vld [vmem:[%s2954_s22] ss:$0 sm:$0xff] }
 0x39c   : > { %1920 = vmatpush3.bf16.msra.mxu1 %v2103_v59  ;;  %v2108_v3 = vld [vmem:[#allocation15 + $0x8] sm:$0xff]  }
 0x39d   : > { %v875_v4 = vmax.f32 %v871_v2, 0.0  ;;  %882 = vrot.lane.b32.xlu0 %v874_v0, %s2411_s14  ;;  %v876_v5 = vrot.slane %v874_v0, 7  ;;  %1921 = vmatprep.subr.bf16.mxu1 %v2407_v1  ;;  %v2107_v0 = vld [vmem:[#allocation15] sm:$0xff]  }
 0x39f   : > { %v877_v6 = vrot.slane %v875_v4, 7  ;;  %884 = vrot.lane.b32.xlu1 %v875_v4, %s2411_s14 }
 0x3a0   : > { %1922 = vmatpush3.bf16.msra.mxu1 %v2104_v60 }
 0x3a1   : > { %v879_v7 = vsel %vm750_vm4, %v877_v6, %v876_v5  ;;  %v878_v8 = vsel %vm750_vm4, %v876_v5, %v877_v6  ;;  %1923 = vmatprep.subr.bf16.mxu1 %v2407_v1 }
 0x3a2   : > { %v880_v14 = vsel %vm2787_vm5, %v879_v7, 0.0 }
 0x3a4   : > { %1924 = vmatpush3.bf16.msra.mxu1 %v2105_v61 }
 0x3a5   : > { %1925 = vmatprep.subr.bf16.mxu1 %v2407_v1 }
 0x3a8   : > { %1926 = vmatpush3.bf16.msra.mxu1 %v2106_v62 }
 0x3b8   : > { %v1109_v9 = vpop.f32.mrb[4].mxu1 }
 0x3b9   : > { %v1889_v10 = vpop.f32.mrb[5].mxu1  ;;  %v1110_v34 = vadd.f32 %v1701_v29, %v1109_v9 }
 0x3ba   : > { %v1112_v11 = vpop.f32.mrb[6].mxu1  ;;  %v2109_v10 = vld [vmem:[#allocation15 + $0x10] sm:$0xff]  }
 0x3bb   : > { %v1890_v12 = vpop.f32.mrb[7].mxu1  ;;  %v1113_v39 = vadd.f32 %v1701_v29, %v1112_v11 }
 0x40f   : > { %v883_v13 = vpop.permute.xlu0 %882 }
 0x410   : > { %v886_v16 = vadd.f32 %v883_v13, %v880_v14  ;;  %v2110_v14 = vld [vmem:[#allocation15 + $0x18] sm:$0xff]  }
 0x411   : > { %v885_v15 = vpop.permute.xlu1 %884 }
 0x412   : > { %v887_v17 = vadd.f32 %v885_v15, %v878_v8 }
 0x414   : > { %v888_v18 = vpack.c.bf16 %v887_v17, %v886_v16  ;;  %v2111_v17 = vld [vmem:[#allocation15 + $0x20] sm:$0xff]  }
 0x416   : > { %1868 = vmatmul.mubr.bf16.vlgmr.msra.gmra.mrb[4].mxu0 %v888_v18 }
 0x417   : > { %1907 = vmatprep.mubr.msk.bf16.mxu0 %vm2408_vm0, %v2407_v1  ;;  %1892 = vmatpush3.bf16.msra.mxu0 %v2091_v19 }
 0x418   : > { %1893 = vmatprep.subr.bf16.mxu0 %v2407_v1 }
 0x41b   : > { %1894 = vmatpush3.bf16.msra.mxu0 %v2092_v20 }
 0x41c   : > { %1895 = vmatprep.subr.bf16.mxu0 %v2407_v1 }
 0x41f   : > { %1896 = vmatpush3.bf16.msra.mxu0 %v2093_v21 }
 0x420   : > { %1897 = vmatprep.subr.bf16.mxu0 %v2407_v1 }
 0x423   : > { %1898 = vmatpush3.bf16.msra.mxu0 %v2094_v22 }
 0x424   : > { %1899 = vmatprep.subr.bf16.mxu0 %v2407_v1 }
 0x427   : > { %1900 = vmatpush3.bf16.msra.mxu0 %v2095_v23 }
 0x428   : > { %1901 = vmatprep.subr.bf16.mxu0 %v2407_v1 }
 0x42b   : > { %1902 = vmatpush3.bf16.msra.mxu0 %v2096_v24  ;;  %v2113_v24 = vld [vmem:[#allocation15 + $0x30] sm:$0xff]  }
 0x42c   : > { %1903 = vmatprep.subr.bf16.mxu0 %v2407_v1 }
 0x42f   : > { %1904 = vmatpush3.bf16.msra.mxu0 %v2097_v26  ;;  %v2114_v26 = vld [vmem:[#allocation15 + $0x38] sm:$0xff]  }
 0x430   : > { %1905 = vmatprep.subr.bf16.mxu0 %v2407_v1 }
 0x433   : > { %1906 = vmatpush3.bf16.msra.mxu0 %v2098_v28 }
 0x434   : > { %1931 = vmatprep.subr.bf16.mxu0 %v2407_v1 }
 0x4e9   : > { %v994_v30 = vpop.f32.mrb[4].mxu0 }
 0x4ea   : > { %v995_v31 = vadd.f32 %v1692_v27, %v994_v30  ;;  %v1869_v32 = vpop.f32.mrb[5].mxu0 }
 0x4eb   : > { %v997_v33 = vpop.f32.mrb[6].mxu0 }
 0x4ec   : > { %v1001_v36 = vmax.f32 %v995_v31, 0.0  ;;  %v998_v37 = vadd.f32 %v1692_v27, %v997_v33  ;;  %v1870_v38 = vpop.f32.mrb[7].mxu0  ;;  %v1719_v27 = vld [vmem:[%s2955_s26] ss:$0 sm:$0xff] }
 0x4ee   : > { %v1116_v40 = vadd.f32 %v1110_v34, %v1001_v36  ;;  %v1002_v41 = vmax.f32 %v998_v37, 0.0 }
 0x4f0   : > { %v2855_v42 = vmax.f32 %v1116_v40, 0.0  ;;  %v1117_v43 = vadd.f32 %v1113_v39, %v1002_v41  ;;  %v1728_v41 = vld [vmem:[%s2956_s25] ss:$0 sm:$0xff] }
 0x4f2   : > { %v2857_v44 = vmax.f32 %v1117_v43, 0.0  ;;  %1127 = vrot.lane.b32.xlu0 %v2855_v42, %s2411_s14  ;;  %v1120_v46 = vrot.slane %v2855_v42, 6 }
 0x4f4   : > { %1129 = vrot.lane.b32.xlu1 %v2857_v44, %s2411_s14  ;;  %v1121_v45 = vrot.slane %v2857_v44, 6 }
 0x4f6   : > { %v1124_v48 = vsel %vm1122_vm6, %v1121_v45, %v1120_v46  ;;  %v1123_v52 = vsel %vm1122_vm6, %v1120_v46, %v1121_v45 }
 0x4f7   : > { %v1125_v50 = vsel %vm2868_vm7, %v1124_v48, 0.0 }
 0x564   : > { %v1128_v49 = vpop.permute.xlu0 %1127 }
 0x565   : > { %v1131_v53 = vadd.f32 %v1128_v49, %v1125_v50 }
 0x566   : > { %v1130_v51 = vpop.permute.xlu1 %1129 }
 0x567   : > { %v1132_v54 = vadd.f32 %v1130_v51, %v1123_v52 }
 0x569   : > { %v1133_v55 = vpack.c.bf16 %v1132_v54, %v1131_v53 }
 0x56b   : > { %1908 = vmatmul.mubr.bf16.vlgmr.msra.gmra.mrb[8].mxu0 %v1133_v55 }
 0x56c   : > { %1947 = vmatprep.mubr.msk.bf16.mxu0 %vm2408_vm0, %v2407_v1  ;;  %1932 = vmatpush3.bf16.msra.mxu0 %v2107_v0 }
 0x56d   : > { %1933 = vmatprep.subr.bf16.mxu0 %v2407_v1 }
 0x570   : > { %1934 = vmatpush3.bf16.msra.mxu0 %v2108_v3 }
 0x571   : > { %1935 = vmatprep.subr.bf16.mxu0 %v2407_v1 }
 0x574   : > { %1936 = vmatpush3.bf16.msra.mxu0 %v2109_v10 }
 0x575   : > { %1937 = vmatprep.subr.bf16.mxu0 %v2407_v1 }
 0x578   : > { %1938 = vmatpush3.bf16.msra.mxu0 %v2110_v14 }
 0x579   : > { %1939 = vmatprep.subr.bf16.mxu0 %v2407_v1 }
 0x57c   : > { %1940 = vmatpush3.bf16.msra.mxu0 %v2111_v17 }
 0x57d   : > { %1941 = vmatprep.subr.bf16.mxu0 %v2407_v1 }
 0x580   : > { %1942 = vmatpush3.bf16.msra.mxu0 %v2112_v25 }
 0x581   : > { %1943 = vmatprep.subr.bf16.mxu0 %v2407_v1 }
 0x584   : > { %1944 = vmatpush3.bf16.msra.mxu0 %v2113_v24 }
 0x585   : > { %1945 = vmatprep.subr.bf16.mxu0 %v2407_v1 }
 0x588   : > { %1946 = vmatpush3.bf16.msra.mxu0 %v2114_v26 }
 0x63e   : > { %v1239_v2 = vpop.f32.mrb[8].mxu0 }
 0x63f   : > { %v1240_v4 = vadd.f32 %v1710_v63, %v1239_v2  ;;  %v1909_v5 = vpop.f32.mrb[9].mxu0 }
 0x640   : > { %v1242_v6 = vpop.f32.mrb[10].mxu0 }
 0x641   : > { %v1246_v7 = vmax.f32 %v1240_v4, 0.0  ;;  %v1243_v8 = vadd.f32 %v1710_v63, %v1242_v6  ;;  %v1910_v9 = vpop.f32.mrb[11].mxu0 }
 0x643   : > { %v1247_v11 = vmax.f32 %v1243_v8, 0.0  ;;  %1254 = vrot.lane.b32.xlu0 %v1246_v7, %s2411_s14  ;;  %v1248_v12 = vrot.slane %v1246_v7, 6 }
 0x645   : > { %v1249_v13 = vrot.slane %v1247_v11, 6  ;;  %1256 = vrot.lane.b32.xlu1 %v1247_v11, %s2411_s14 }
 0x647   : > { %v1251_v15 = vsel %vm1122_vm6, %v1249_v13, %v1248_v12  ;;  %v1250_v16 = vsel %vm1122_vm6, %v1248_v12, %v1249_v13 }
 0x648   : > { %v1252_v19 = vsel %vm2868_vm7, %v1251_v15, 0.0 }
 0x6b5   : > { %v1255_v18 = vpop.permute.xlu0 %1254 }
 0x6b6   : > { %v1258_v21 = vadd.f32 %v1255_v18, %v1252_v19 }
 0x6b7   : > { %v1257_v20 = vpop.permute.xlu1 %1256 }
 0x6b8   : > { %v1259_v22 = vadd.f32 %v1257_v20, %v1250_v16 }
 0x6ba   : > { %v1260_v23 = vpack.c.bf16 %v1259_v22, %v1258_v21 }
 0x6bc   : > { %1928 = vmatmul.mubr.bf16.vlgmr.msra.gmra.mrb[8].mxu1 %v1260_v23 }
 0x78f   : > { %v1366_v28 = vpop.f32.mrb[8].mxu1 }
 0x790   : > { %v1367_v29 = vadd.f32 %v1719_v27, %v1366_v28  ;;  %v1929_v30 = vpop.f32.mrb[9].mxu1 }
 0x791   : > { %v1369_v31 = vpop.f32.mrb[10].mxu1 }
 0x792   : > { %v1373_v32 = vmax.f32 %v1367_v29, 0.0  ;;  %v1370_v33 = vadd.f32 %v1719_v27, %v1369_v31  ;;  %v1930_v34 = vpop.f32.mrb[11].mxu1 }
 0x794   : > { %v1375_v36 = vadd.f32 %v1373_v32, %v2855_v42  ;;  %v1374_v37 = vmax.f32 %v1370_v33, 0.0 }
 0x796   : > { %v1376_v38 = vadd.f32 %v1374_v37, %v2857_v44  ;;  %v1377_v1 = vmax.f32 %v1375_v36, 0.0 }
 0x798   : > { %v1378_v39 = vmax.f32 %v1376_v38, 0.0 }
 0x79a   : > { %v1379_v40 = vpack.c.bf16 %v1378_v39, %v1377_v1 }
 0x79c   : > { %1948 = vmatmul.mubr.bf16.vlgmr.msra.gmra.mrb[12].mxu0 %v1379_v40 }
 0x86f   : > { %v1485_v43 = vpop.f32.mrb[12].mxu0 }
 0x870   : > { %v1949_v45 = vpop.f32.mrb[13].mxu0  ;;  %v1486_v47 = vadd.f32 %v1728_v41, %v1485_v43 }
 0x871   : > { %v1488_v46 = vpop.f32.mrb[14].mxu0 }
 0x872   : > { %v1489_v48 = vadd.f32 %v1728_v41, %v1488_v46  ;;  %v1950_v49 = vpop.f32.mrb[15].mxu0 }
 0x874   : > { %v1746_v42 = vpack.c.bf16 %v1489_v48, %v1486_v47 }
 0x876   : > { %1747 = vst [vmem:[%s594_s30] sm:$0xff] %v1746_v42  }
 0x877 PF: > { %s29_s29 = sadd.s32 1, %s2393_s29  }
 0x878   : > { %p26_p3 = scmp.ge.s32.totalorder %s29_s29, 4  }
 0x87a   :  { %28 = sbr.rel (!%p26_p3) target bundleno = 10 (0xa), region = 143 }
 0x881   :  { %1524 = vsyncpa [#allocation3], 1 }
 0x882   :  { %1526 = vsyncpa [#allocation3 + $0x1], 1 }
 0x883   :  { %1527 = vsyncpa [#allocation5], 1 }
 0x884   :  { %1528 = vsyncpa [#allocation8], 1 }
 0x885   :  { %1529 = vsyncpa [#allocation11], 1 }
 0x886   :  { %1530 = vsyncpa [#allocation14], 1 }

</bundles_post_ra>
